<compile_context>
chip_gen: v7x
topology: tpu7x:2x2x1
jax: 0.10.0
libtpu: 0.0.40
codegen_flags: <defaults>
</compile_context>

<pallas_src>
import math

import jax
import jax.numpy as jnp
from jax.experimental import pallas as pl
from jax.experimental.pallas import tpu as pltpu


def build_pe_table(d_model: int, max_len: int = 5000) -> jnp.ndarray:
    """Sinusoidal PE buffer, identical math to the torch module.

    Returns (max_len, d_model) float32 (torch stores (max_len, 1, d_model);
    the singleton broadcast dim is handled inside the kernel/wrapper)."""
    position = jnp.arange(max_len, dtype=jnp.float32)[:, None]              # (L, 1)
    div_term = jnp.exp(
        jnp.arange(0, d_model, 2, dtype=jnp.float32) * (-math.log(10000.0) / d_model)
    )                                                                        # (D/2,)
    ang = position * div_term                                                # (L, D/2)
    pe = jnp.zeros((max_len, d_model), dtype=jnp.float32)
    pe = pe.at[:, 0::2].set(jnp.sin(ang))
    pe = pe.at[:, 1::2].set(jnp.cos(ang))
    return pe


def _make_kernel(threshold: int, inv_keep: float, compute_dtype, training: bool,
                 flat: bool):
    """Kernel factory. All closed-over values are Python scalars / dtypes
    (jaxpr literals), never jnp arrays -> no captured-constant errors."""
    if training:
        def kernel(x_ref, pe_ref, bits_ref, o_ref):
            x = x_ref[...].astype(compute_dtype)
            pe = pe_ref[...].astype(compute_dtype)          # no-op (pre-cast in wrapper)
            if not flat:
                pe = pe[:, None, :]                         # broadcast over batch
            y = x + pe
            # integer-domain dropout: drop iff bits < threshold (16-bit resolution)
            keep = bits_ref[...] >= threshold
            y = jnp.where(keep, y * inv_keep, 0.0)
            o_ref[...] = y.astype(o_ref.dtype)
    else:
        def kernel(x_ref, pe_ref, o_ref):
            x = x_ref[...].astype(compute_dtype)
            pe = pe_ref[...].astype(compute_dtype)
            if not flat:
                pe = pe[:, None, :]
            o_ref[...] = (x + pe).astype(o_ref.dtype)
    return kernel


def _choose_seq_tile(S: int, row_bytes_x: int, row_bytes_total: int,
                     target_x_block: int = 4 << 20,
                     vmem_budget: int = 20 << 20) -> int:
    """Rows per block (multiple of 8): ~4 MiB x blocks, capped so the whole
    double-buffered working set (all streams) stays under `vmem_budget`."""
    r1 = target_x_block // max(1, row_bytes_x)
    r2 = vmem_budget // max(1, 2 * row_bytes_total)
    rows = max(8, (min(r1, r2) // 8) * 8)
    s_up = ((S + 7) // 8) * 8
    return min(rows, s_up)


def positional_encoding_forward(x, pe_table, *, p=0.1, training=False, key=None):
    """x: (S, B, D).  Returns dropout(x + pe[:S]) in torch-promoted dtype."""
    S, B, D = x.shape
    assert pe_table.ndim == 2 and pe_table.shape[1] == D and pe_table.shape[0] >= S

    # torch: x + pe (f32 buffer) promotes; dropout keeps that dtype.
    out_dtype = jnp.promote_types(x.dtype, pe_table.dtype)
    compute_dtype = out_dtype if out_dtype == jnp.bfloat16 else jnp.float32

    use_dropout = bool(training) and p > 0.0
    if use_dropout and p >= 1.0:
        # torch nn.Dropout(p=1.0) zeroes everything.
        return jnp.zeros((S, B, D), out_dtype)

    # Layout: native (S, B, D) when D is lane-dense (multiple of 128), so the
    # PE stream is only 1/B of x.  Otherwise flatten trailing dims into one
    # B*D lane axis (pre-broadcast PE) to avoid masked partial stores.
    flat = (D % 128 != 0)

    pe_cast = pe_table.astype(compute_dtype)
    x_itm = jnp.dtype(x.dtype).itemsize
    pe_itm = jnp.dtype(compute_dtype).itemsize
    out_itm = jnp.dtype(out_dtype).itemsize

    if flat:
        x_in = x.reshape(S, B * D)
        pe_in = jnp.broadcast_to(pe_cast[:S, None, :], (S, B, D)).reshape(S, B * D)
        row_x, row_pe = B * D * x_itm, B * D * pe_itm
    else:
        x_in = x
        pe_in = pe_cast
        row_x, row_pe = B * D * x_itm, D * pe_itm
    row_out = B * D * out_itm
    row_bits = B * D * 2 if use_dropout else 0

    ts = _choose_seq_tile(S, row_x, row_x + row_pe + row_out + row_bits)
    grid = (pl.cdiv(S, ts),)

    if flat:
        x_spec = pl.BlockSpec((ts, B * D), lambda s: (s, 0))
        pe_spec = pl.BlockSpec((ts, B * D), lambda s: (s, 0))
        out_spec = pl.BlockSpec((ts, B * D), lambda s: (s, 0))
        bits_spec = pl.BlockSpec((ts, B * D), lambda s: (s, 0))
        bits_shape = (S, B * D)
        out_shape = jax.ShapeDtypeStruct((S, B * D), out_dtype)
    else:
        x_spec = pl.BlockSpec((ts, B, D), lambda s: (s, 0, 0))
        pe_spec = pl.BlockSpec((ts, D), lambda s: (s, 0))     # PE rows via index_map
        out_spec = pl.BlockSpec((ts, B, D), lambda s: (s, 0, 0))
        bits_spec = pl.BlockSpec((ts, B, D), lambda s: (s, 0, 0))
        bits_shape = (S, B, D)
        out_shape = jax.ShapeDtypeStruct((S, B, D), out_dtype)

    in_specs = [x_spec, pe_spec]
    inputs = [x_in, pe_in]

    # drop iff bits < round(p * 2^16); survivors scaled by 1/(1-p)
    threshold = min(int(round(p * 65536.0)), 65535)
    inv_keep = 1.0 / (1.0 - p) if use_dropout else 1.0

    if use_dropout:
        if key is None:
            key = jax.random.PRNGKey(0)
        bits = jax.random.bits(key, bits_shape, dtype=jnp.uint16)
        in_specs.append(bits_spec)
        inputs.append(bits)

    out = pl.pallas_call(
        _make_kernel(threshold, inv_keep, compute_dtype, use_dropout, flat),
        out_shape=out_shape,
        grid=grid,
        in_specs=in_specs,
        out_specs=out_spec,
        compiler_params=pltpu.CompilerParams(
            dimension_semantics=("parallel",)),
    )(*inputs)

    if flat:
        out = out.reshape(S, B, D)
    return out


if __name__ == "__main__":
    key = jax.random.PRNGKey(0)
    kx, kd, kx2 = jax.random.split(key, 3)

    # --- small demo shape (flattened lane path, D=32 < 128) --------------
    S, B, D = 8, 2, 32
    x = jax.random.normal(kx, (S, B, D), dtype=jnp.float32)
    pe_table = build_pe_table(D, max_len=5000)
    ref = x + pe_table[:S][:, None, :]               # broadcast over batch

    # eval mode (dropout = identity): must match the reference exactly
    y_eval = positional_encoding_forward(x, pe_table, p=0.1, training=False)
    y_eval = jax.block_until_ready(y_eval)
    assert y_eval.shape == x.shape and y_eval.dtype == ref.dtype
    assert jnp.allclose(y_eval, ref, atol=1e-6, rtol=1e-6)

    # training mode: dropped entries are exactly 0, survivors scaled by 1/(1-p)
    y_train = positional_encoding_forward(x, pe_table, p=0.1, training=True, key=kd)
    y_train = jax.block_until_ready(y_train)
    assert y_train.shape == x.shape
    scaled = ref / (1.0 - 0.1)
    kept = y_train != 0
    assert jnp.allclose(jnp.where(kept, y_train, scaled), scaled, atol=1e-5, rtol=1e-5)

    # --- lane-dense shape (native (S, B, D) path, D=128) -----------------
    S2, B2, D2 = 16, 4, 128
    x2 = jax.random.normal(kx2, (S2, B2, D2), dtype=jnp.float32)
    pe_table2 = build_pe_table(D2, max_len=5000)
    ref2 = x2 + pe_table2[:S2][:, None, :]
    y2 = positional_encoding_forward(x2, pe_table2, p=0.1, training=False)
    y2 = jax.block_until_ready(y2)
    assert jnp.allclose(y2, ref2, atol=1e-6, rtol=1e-6)

    print("KERNEL_OK")
</pallas_src>

<mosaic_0001>
module attributes {stable_mosaic.version = 11 : i64} {
  func.func @kernel(%arg0: i32, %arg1: memref<8x64xf32, #tpu.memory_space<vmem>>, %arg2: memref<8x64xf32, #tpu.memory_space<vmem>>, %arg3: memref<8x64xf32, #tpu.memory_space<vmem>>) attributes {dimension_semantics = [#tpu.dimension_semantics<parallel>], iteration_bounds = array<i64: 1>, scalar_prefetch = 0 : i64, scratch_operands = 0 : i64, tpu.core_type = #tpu.core_type<tc>, window_params = [{transform_indices = @transform_0, window_bounds = array<i64: 8, 64>}, {transform_indices = @transform_1, window_bounds = array<i64: 8, 64>}, {transform_indices = @transform_2, window_bounds = array<i64: 8, 64>}]} {
    %c0 = arith.constant 0 : index
    %c0_0 = arith.constant 0 : index
    %0 = vector.load %arg1[%c0, %c0_0] : memref<8x64xf32, #tpu.memory_space<vmem>>, vector<8x64xf32>
    %c0_1 = arith.constant 0 : index
    %c0_2 = arith.constant 0 : index
    %1 = vector.load %arg2[%c0_1, %c0_2] : memref<8x64xf32, #tpu.memory_space<vmem>>, vector<8x64xf32>
    %2 = arith.addf %0, %1 : vector<8x64xf32>
    %c0_3 = arith.constant 0 : index
    %c0_4 = arith.constant 0 : index
    %3 = vector.load %arg3[%c0_3, %c0_4] : memref<8x64xf32, #tpu.memory_space<vmem>>, vector<8x64xf32>
    tpu.vector_store %arg3[%c0_3, %c0_4], %2 {strides = array<i32>} : memref<8x64xf32, #tpu.memory_space<vmem>>, vector<8x64xf32>,
    return
  }
  func.func @transform_0(%arg0: i32) -> (i32, i32) {
    %c0_i32 = arith.constant 0 : i32
    %c0_i32_0 = arith.constant 0 : i32
    return %arg0, %c0_i32 : i32, i32
  }
  func.func @transform_1(%arg0: i32) -> (i32, i32) {
    %c0_i32 = arith.constant 0 : i32
    %c0_i32_0 = arith.constant 0 : i32
    return %arg0, %c0_i32 : i32, i32
  }
  func.func @transform_2(%arg0: i32) -> (i32, i32) {
    %c0_i32 = arith.constant 0 : i32
    %c0_i32_0 = arith.constant 0 : i32
    return %arg0, %c0_i32 : i32, i32
  }
}

</mosaic_0001>

<bundles_post_ra>
// kernel: tpu_custom_call.1
= control target key start
LH: loop header
LB: loop body
LE: loop exit
PB: predicated region body
PF: predicated region fallthrough
CT: control target
= control target key end

     0   :  { %7 = vsyncpa [#allocation3], 0  ;;  %s186_s0 = inlined_call_operand.hbm [shape: f32[8,64], index: 0, kind: input, shape index: {}]   ;;  %s187_s1 = inlined_call_operand.hbm [shape: f32[8,64], index: 1, kind: input, shape index: {}]   ;;  %s188_s2 = inlined_call_operand.hbm [shape: f32[8,64], index: 2, kind: output, shape index: {}]  }
   0x1   :  { %8 = vsyncpa [#allocation6], 0 }
   0x2   :  { %9 = vsyncpa [#allocation4], 0  ;;  %s132_s9 = smov [#allocation2]   ;;  %s133_s11 = smov [#allocation5]  }
   0x3   :  { %s16_s10 = sshll.u32 %s132_s9, 4  ;;  %s26_s12 = sshll.u32 %s133_s11, 4  ;;  %s17_s10 = int_to_ptr.vmem [resolvable:$true] %s16_s10  ;;  %s27_s12 = int_to_ptr.vmem [resolvable:$true] %s26_s12 }
   0x4   :  { %s60_s15 = scalar_lea.hbm %s186_s0, 128 }
   0x5   :  { %p61_p0 = scmp.ne.s32.totalorder %s186_s0, %s60_s15  ;;  %p64_p1 = scmp.lt.u32.totalorder %s60_s15, %s186_s0 }
   0x7   :  { %p66_p2 = pnand %p64_p1, %p61_p0 }
   0x9   :  { %69 = shalt.err (!%p66_p2)
}
   0xa   :  { %s70_s20 = scalar_lea.vmem %s17_s10, 128  ;;  %p75_p4 = scmp.lt.s32.totalorder %s17_s10, %s17_s10 }
   0xb   :  { %p71_p3 = scmp.ne.s32.totalorder %s17_s10, %s70_s20  ;;  %p76_p5 = scmp.lt.s32.totalorder %s70_s20, %s70_s20 }
   0xd   :  { %p77_p6 = por %p76_p5, %p75_p4 }
   0xf   :  { %p78_p7 = pnand %p77_p6, %p71_p3 }
  0x11   :  { %81 = shalt.err (!%p78_p7)
}
  0x12   :  { %19 = dma.hbm_to_vmem [thread:$0]  %s186_s0, 128, %s17_s10, [#allocation3]  }
  0x13   :  { %s82_s25 = scalar_lea.hbm %s187_s1, 128 }
  0x14   :  { %p83_p8 = scmp.ne.s32.totalorder %s187_s1, %s82_s25  ;;  %p86_p9 = scmp.lt.u32.totalorder %s82_s25, %s187_s1 }
  0x16   :  { %p88_p10 = pnand %p86_p9, %p83_p8 }
  0x18   :  { %91 = shalt.err (!%p88_p10)
}
  0x19   :  { %s92_s30 = scalar_lea.vmem %s27_s12, 128  ;;  %p97_p12 = scmp.lt.s32.totalorder %s27_s12, %s27_s12 }
  0x1a   :  { %p93_p11 = scmp.ne.s32.totalorder %s27_s12, %s92_s30  ;;  %p98_p13 = scmp.lt.s32.totalorder %s92_s30, %s92_s30 }
  0x1c   :  { %p99_p0 = por %p98_p13, %p97_p12 }
  0x1e   :  { %p100_p1 = pnand %p99_p0, %p93_p11 }
  0x20   :  { %103 = shalt.err (!%p100_p1)
}
  0x21   :  { %29 = dma.hbm_to_vmem [thread:$0]  %s187_s1, 128, %s27_s12, [#allocation6]  }
  0x22   :  { %126 = dma.done.wait [#allocation3], 128  }
  0x23   :  { %127 = vsyncadd [#allocation3], 4294967168 }
  0x24   :  { %128 = dma.done.wait [#allocation6], 128  }
  0x25   :  { %129 = vsyncadd [#allocation6], 4294967168  ;;  %s134_s4 = smov [#allocation7]   ;;  %v36_v0 = vld [vmem:[#allocation2] sm:$0xff]  ;;  %v37_v1 = vld [vmem:[#allocation5] sm:$0xff]  ;;  %vm39_vm0 = vcmask 523264  }
  0x26   :  { %s47_s5 = sshll.u32 %s134_s4, 4  ;;  %v38_v2 = vadd.f32 %v37_v1, %v36_v0  ;;  %s48_s5 = int_to_ptr.vmem [resolvable:$true] %s47_s5 }
  0x27   :  { %s104_s6 = scalar_lea.vmem %s48_s5, 128  ;;  %p109_p3 = scmp.lt.s32.totalorder %s48_s5, %s48_s5 }
  0x28   :  { %40 = vst.msk [vmem:[#allocation7] sm:$0xff] %vm39_vm0, %v38_v2  ;;  %p105_p2 = scmp.ne.s32.totalorder %s48_s5, %s104_s6  ;;  %p110_p4 = scmp.lt.s32.totalorder %s104_s6, %s104_s6 }
  0x2a   :  { %p111_p5 = por %p110_p4, %p109_p3 }
  0x2c   :  { %p112_p6 = pnand %p111_p5, %p105_p2 }
  0x2e   :  { %115 = shalt.err (!%p112_p6)
}
  0x2f   :  { %s116_s8 = scalar_lea.hbm %s188_s2, 128 }
  0x30   :  { %p117_p7 = scmp.ne.s32.totalorder %s188_s2, %s116_s8  ;;  %p120_p8 = scmp.lt.u32.totalorder %s116_s8, %s188_s2 }
  0x32   :  { %p122_p9 = pnand %p120_p8, %p117_p7 }
  0x34   :  { %125 = shalt.err (!%p122_p9)
}
  0x35   :  { %50 = dma.vmem_to_hbm [thread:$0]  %s48_s5, 128, %s188_s2, [#allocation4]  }
  0x36   :  { %130 = dma.done.wait [#allocation4], 128  }
  0x37   :  { %131 = vsyncadd [#allocation4], 4294967168 }
  0x38   :  { %54 = vsyncpa [#allocation3], 1 }
  0x39   :  { %55 = vsyncpa [#allocation6], 1 }
  0x3a   :  { %56 = vsyncpa [#allocation4], 1 }

</bundles_post_ra>
